<compile_context>
chip_gen: v5e
topology: v5e:2x2
jax: 0.10.0
libtpu: 0.0.40
codegen_flags: <defaults>
</compile_context>

<pallas_src>
import functools

import jax
import jax.numpy as jnp
from jax.experimental import pallas as pl
from jax.experimental.pallas import tpu as pltpu


# ----------------------------------------------------------------------------
# Fused kernel: pool -> conv1+bias+ReLU -> (BN1 folded) -> conv2+biasmap+ReLU
#               -> BN2, entirely in VMEM, spatial-in-lanes layout.
# ----------------------------------------------------------------------------
def _down_fused_kernel(x_ref, w1_ref, w2_ref, pvec_ref, bmap_ref, mask_ref,
                       o_ref, scr1_ref, scr2_ref,
                       *, ipb, Hp, Wp, Cmid, Cout):
    HW = Hp * Wp
    L = ipb * HW                      # lanes of work per grid step
    P = Wp + 1                        # flat-layout halo for the 3x3 taps
    taps = [(dy - 1, dx - 1) for dy in range(3) for dx in range(3)]

    # Hygiene only: every scratch lane the convs read is either freshly
    # written this step or zeroed by the tap mask (select), so results never
    # depend on this init.  Runs once; borders stay zero afterwards.
    @pl.when(pl.program_id(0) == 0)
    def _init():
        scr1_ref[...] = jnp.zeros_like(scr1_ref)
        scr2_ref[...] = jnp.zeros_like(scr2_ref)

    # ---- 2x2 max-pool, staged into the haloed scratch (spatial in lanes) ----
    for i in range(ipb):
        p = jnp.maximum(jnp.maximum(x_ref[i, 0], x_ref[i, 1]),
                        jnp.maximum(x_ref[i, 2], x_ref[i, 3]))   # (Cin, HW)
        scr1_ref[:, P + i * HW:P + (i + 1) * HW] = p

    # Tap validity masks (precomputed in the wrapper, tiled per image).
    masks = [mask_ref[k:k + 1, :] > 0.0 for k in range(9)]       # (1, L) bools

    def conv3x3(src_ref, w_ref):
        acc = None
        for k, (dh, dw) in enumerate(taps):
            d = dh * Wp + dw
            tap = src_ref[:, P + d:P + d + L]          # shifted view, (C, L)
            tap = jnp.where(masks[k], tap, 0.0)        # zero pad / image seams
            c = jnp.dot(w_ref[k], tap, preferred_element_type=jnp.float32)
            acc = c if acc is None else acc + c
        return acc                                     # (C_out, L), f32

    # ---- conv1 + bias + ReLU (BN1 folded into conv2 / the bias map) ---------
    b1 = pvec_ref[0:Cmid, 0:1]
    h1 = jnp.maximum(conv3x3(scr1_ref, w1_ref) + b1, 0.0)        # (Cmid, L)
    # TODO(synk): Dropout(p=0.2) is identity in eval mode; train-mode dropout
    # and train-mode (batch-statistics) BatchNorm are not implemented.
    scr2_ref[:, P:P + L] = h1                                    # stage in VMEM

    # ---- conv2 (s1-scaled weights) + per-pixel bias map + ReLU + BN2 --------
    acc2 = conv3x3(scr2_ref, w2_ref)                             # (Cout, L)
    s2 = pvec_ref[0:Cout, 1:2]
    t2 = pvec_ref[0:Cout, 2:3]
    bmap = bmap_ref[...]                                         # (Cout, HW)
    for i in range(ipb):
        y = acc2[:, i * HW:(i + 1) * HW] + bmap
        o_ref[i] = (jnp.maximum(y, 0.0) * s2 + t2).astype(o_ref.dtype)


# ----------------------------------------------------------------------------
# Wrapper: NCHW in / NCHW out, like the PyTorch module.
# ----------------------------------------------------------------------------
def down_forward(x_nchw, params, images_per_block=None):
    N, Cin, H, W = x_nchw.shape
    assert H % 2 == 0 and W % 2 == 0, "MaxPool2d(2) path assumes even H, W"
    Hp, Wp = H // 2, W // 2
    HW = Hp * Wp
    Cmid = params["w1"].shape[-1]
    Cout = params["w2"].shape[-1]

    # Pick images_per_block: >=256 lanes of matmul work per step to amortize
    # the ~600-cycle per-grid-step overhead, but keep >=2 grid steps so the
    # input/output DMAs pipeline and both v7x TensorCores get work.
    if images_per_block is None:
        want = max(1, -(-256 // HW))
        want = min(want, max(1, N // 2))
        ipb = 1
        for d in range(1, want + 1):
            if N % d == 0:
                ipb = d
    else:
        ipb = images_per_block
    assert N % ipb == 0
    L = ipb * HW

    # Lane-dense input layout: (N, 2x2-window, Cin, Hp*Wp), spatial last.
    xr = (x_nchw.reshape(N, Cin, Hp, 2, Wp, 2)
                .transpose(0, 3, 5, 1, 2, 4)
                .reshape(N, 4, Cin, HW))

    # Weights in per-tap (9, C_out, C_in) form; fold BN1 scale into conv2.
    w1 = params["w1"]                                    # (3,3,Cin,Cmid) HWIO
    w2 = params["w2"]                                    # (3,3,Cmid,Cout)
    s1, t1 = params["s1"], params["t1"]
    w1k = jnp.transpose(w1, (0, 1, 3, 2)).reshape(9, Cmid, Cin)
    w2k = jnp.transpose(w2 * s1[None, None, :, None],
                        (0, 1, 3, 2)).reshape(9, Cout, Cmid)

    # Per-pixel bias map for conv2: b2 plus BN1's shift t1 pushed through
    # conv2.  Zero padding makes the t1 contribution border-dependent, hence a
    # (Cout, Hp, Wp) map rather than a single per-channel vector.
    wt = jnp.einsum("yxco,c->oyx", w2, t1)               # (Cout, 3, 3)
    off = jnp.arange(3) - 1
    vy = ((jnp.arange(Hp)[None, :] + off[:, None] >= 0) &
          (jnp.arange(Hp)[None, :] + off[:, None] < Hp)).astype(jnp.float32)
    vx = ((jnp.arange(Wp)[None, :] + off[:, None] >= 0) &
          (jnp.arange(Wp)[None, :] + off[:, None] < Wp)).astype(jnp.float32)
    bmap = (params["b2"][:, None, None]
            + jnp.einsum("oyx,yh,xw->ohw", wt, vy, vx)).reshape(Cout, HW)

    # Remaining per-channel vectors packed into ONE tile: [b1 | s2 | t2].
    cmax = max(Cmid, Cout)
    padv = lambda v: jnp.pad(v, (0, cmax - v.shape[0]))
    pvec = jnp.stack([padv(params["b1"]), padv(params["s2"]),
                      padv(params["t2"])], axis=1)       # (cmax, 3)

    # 0/1 tap-validity masks (zero padding + cross-image seams), tiled to L.
    yy = jnp.repeat(jnp.arange(Hp), Wp)                  # (HW,)
    xx = jnp.tile(jnp.arange(Wp), Hp)                    # (HW,)
    rows = []
    for dy in range(3):
        for dx in range(3):
            rows.append((yy + dy - 1 >= 0) & (yy + dy - 1 < Hp) &
                        (xx + dx - 1 >= 0) & (xx + dx - 1 < Wp))
    tap_ok = jnp.tile(jnp.stack(rows).astype(jnp.float32), (1, ipb))  # (9, L)

    kernel = functools.partial(_down_fused_kernel, ipb=ipb, Hp=Hp, Wp=Wp,
                               Cmid=Cmid, Cout=Cout)

    out = pl.pallas_call(
        kernel,
        out_shape=jax.ShapeDtypeStruct((N, Cout, HW), x_nchw.dtype),
        grid=(N // ipb,),
        in_specs=[
            pl.BlockSpec((ipb, 4, Cin, HW), lambda n: (n, 0, 0, 0)),
            pl.BlockSpec((9, Cmid, Cin), lambda n: (0, 0, 0)),
            pl.BlockSpec((9, Cout, Cmid), lambda n: (0, 0, 0)),
            pl.BlockSpec((cmax, 3), lambda n: (0, 0)),
            pl.BlockSpec((Cout, HW), lambda n: (0, 0)),
            pl.BlockSpec((9, L), lambda n: (0, 0)),
        ],
        out_specs=pl.BlockSpec((ipb, Cout, HW), lambda n: (n, 0, 0)),
        scratch_shapes=[
            pltpu.VMEM((Cin, L + 2 * (Wp + 1)), jnp.float32),   # pooled, haloed
            pltpu.VMEM((Cmid, L + 2 * (Wp + 1)), jnp.float32),  # conv1 act.
        ],
        compiler_params=pltpu.CompilerParams(
            dimension_semantics=("parallel",),
            vmem_limit_bytes=32 * 1024 * 1024),
    )(xr, w1k, w2k, pvec, bmap, tap_ok)

    # Lane-dense output (channels in sublanes, Hp*Wp in lanes): NCHW is now a
    # pure reshape -- no transpose epilogue.
    return out.reshape(N, Cout, Hp, Wp)


# ----------------------------------------------------------------------------
# Pure-JAX reference for validation.
# ----------------------------------------------------------------------------
def down_reference(x_nchw, params):
    x = jnp.transpose(x_nchw, (0, 2, 3, 1))
    p = jax.lax.reduce_window(x, -jnp.inf, jax.lax.max,
                              (1, 2, 2, 1), (1, 2, 2, 1), "VALID")

    def block(a, w, b, s, t):
        y = jax.lax.conv_general_dilated(
            a, w, (1, 1), "SAME",
            dimension_numbers=("NHWC", "HWIO", "NHWC")) + b
        y = jnp.maximum(y, 0.0)
        return y * s + t

    h = block(p, params["w1"], params["b1"], params["s1"], params["t1"])
    y = block(h, params["w2"], params["b2"], params["s2"], params["t2"])
    return jnp.transpose(y, (0, 3, 1, 2))


def make_params(key, cin, cmid, cout):
    ks = jax.random.split(key, 12)
    eps = 1e-5

    def bn_fold(kg, kb, km, kv, c):
        gamma = 1.0 + 0.1 * jax.random.normal(kg, (c,), jnp.float32)
        beta = 0.1 * jax.random.normal(kb, (c,), jnp.float32)
        rmean = 0.1 * jax.random.normal(km, (c,), jnp.float32)
        rvar = 1.0 + 0.5 * jax.random.uniform(kv, (c,), jnp.float32)
        scale = gamma / jnp.sqrt(rvar + eps)
        shift = beta - rmean * scale
        return scale, shift

    w1 = 0.1 * jax.random.normal(ks[0], (3, 3, cin, cmid), jnp.float32)
    b1 = 0.1 * jax.random.normal(ks[1], (cmid,), jnp.float32)
    s1, t1 = bn_fold(ks[2], ks[3], ks[4], ks[5], cmid)
    w2 = 0.1 * jax.random.normal(ks[6], (3, 3, cmid, cout), jnp.float32)
    b2 = 0.1 * jax.random.normal(ks[7], (cout,), jnp.float32)
    s2, t2 = bn_fold(ks[8], ks[9], ks[10], ks[11], cout)
    return dict(w1=w1, b1=b1, s1=s1, t1=t1, w2=w2, b2=b2, s2=s2, t2=t2)


if __name__ == "__main__":
    key = jax.random.PRNGKey(0)
    kx, kp = jax.random.split(key)

    N, Cin, H, W = 2, 4, 16, 16          # Down(in_channels=4, out_channels=8)
    Cmid = Cout = 8
    params = make_params(kp, Cin, Cmid, Cout)
    down_jit = jax.jit(down_forward)

    # Small batch (ipb=1, 2 pipelined grid steps).
    x = jax.random.normal(kx, (N, Cin, H, W), jnp.float32)
    out = jax.block_until_ready(down_jit(x, params))
    assert out.shape == (N, Cout, H // 2, W // 2), out.shape
    ref = jax.block_until_ready(down_reference(x, params))
    assert jnp.allclose(out, ref, rtol=5e-4, atol=5e-4), (
        float(jnp.max(jnp.abs(out - ref))))

    # Larger batch exercises images_per_block > 1 (ipb=4 -> 256-lane matmuls,
    # 2 pipelined grid steps).
    x8 = jax.random.normal(kx, (8, Cin, H, W), jnp.float32)
    out8 = jax.block_until_ready(down_jit(x8, params))
    ref8 = jax.block_until_ready(down_reference(x8, params))
    assert jnp.allclose(out8, ref8, rtol=5e-4, atol=5e-4), (
        float(jnp.max(jnp.abs(out8 - ref8))))

    print("KERNEL_OK")
</pallas_src>

<mosaic_0001>
module attributes {stable_mosaic.version = 11 : i64} {
  func.func @_down_fused_kernel(%arg0: i32, %arg1: memref<1x4x4x64xf32, #tpu.memory_space<vmem>>, %arg2: memref<9x8x4xf32, #tpu.memory_space<vmem>>, %arg3: memref<9x8x8xf32, #tpu.memory_space<vmem>>, %arg4: memref<8x3xf32, #tpu.memory_space<vmem>>, %arg5: memref<8x64xf32, #tpu.memory_space<vmem>>, %arg6: memref<9x64xf32, #tpu.memory_space<vmem>>, %arg7: memref<1x8x64xf32, #tpu.memory_space<vmem>>, %arg8: memref<4x82xf32, #tpu.memory_space<vmem>>, %arg9: memref<8x82xf32, #tpu.memory_space<vmem>>) attributes {dimension_semantics = [#tpu.dimension_semantics<parallel>], iteration_bounds = array<i64: 2>, scalar_prefetch = 0 : i64, scratch_operands = 2 : i64, tpu.core_type = #tpu.core_type<tc>, window_params = [{transform_indices = @transform_0, window_bounds = array<i64: 1, 4, 4, 64>}, {pipeline_mode = #tpu.pipeline_mode<synchronous>, transform_indices = @transform_1, window_bounds = array<i64: 9, 8, 4>}, {pipeline_mode = #tpu.pipeline_mode<synchronous>, transform_indices = @transform_2, window_bounds = array<i64: 9, 8, 8>}, {pipeline_mode = #tpu.pipeline_mode<synchronous>, transform_indices = @transform_3, window_bounds = array<i64: 8, 3>}, {pipeline_mode = #tpu.pipeline_mode<synchronous>, transform_indices = @transform_4, window_bounds = array<i64: 8, 64>}, {pipeline_mode = #tpu.pipeline_mode<synchronous>, transform_indices = @transform_5, window_bounds = array<i64: 9, 64>}, {transform_indices = @transform_6, window_bounds = array<i64: 1, 8, 64>}]} {
    %c0_i32 = arith.constant 0 : i32
    %0 = arith.cmpi eq, %arg0, %c0_i32 : i32
    %1 = arith.extui %0 : i1 to i32
    %c0_i32_0 = arith.constant 0 : i32
    %2 = arith.cmpi ne, %1, %c0_i32_0 : i32
    scf.if %2 {
      %cst_172 = arith.constant 0.000000e+00 : f32
      %221 = vector.broadcast %cst_172 : f32 to vector<4x82xf32>
      %c0_173 = arith.constant 0 : index
      %c0_174 = arith.constant 0 : index
      %222 = vector.load %arg8[%c0_173, %c0_174] : memref<4x82xf32, #tpu.memory_space<vmem>>, vector<4x82xf32>
      tpu.vector_store %arg8[%c0_173, %c0_174], %221 {strides = array<i32>} : memref<4x82xf32, #tpu.memory_space<vmem>>, vector<4x82xf32>,
      %cst_175 = arith.constant 0.000000e+00 : f32
      %223 = vector.broadcast %cst_175 : f32 to vector<8x82xf32>
      %c0_176 = arith.constant 0 : index
      %c0_177 = arith.constant 0 : index
      %224 = vector.load %arg9[%c0_176, %c0_177] : memref<8x82xf32, #tpu.memory_space<vmem>>, vector<8x82xf32>
      tpu.vector_store %arg9[%c0_176, %c0_177], %223 {strides = array<i32>} : memref<8x82xf32, #tpu.memory_space<vmem>>, vector<8x82xf32>,
    } else {
    }
    %c0 = arith.constant 0 : index
    %c0_1 = arith.constant 0 : index
    %c0_2 = arith.constant 0 : index
    %c0_3 = arith.constant 0 : index
    %3 = vector.load %arg1[%c0, %c0_1, %c0_2, %c0_3] : memref<1x4x4x64xf32, #tpu.memory_space<vmem>>, vector<1x1x4x64xf32>
    %4 = vector.shape_cast %3 : vector<1x1x4x64xf32> to vector<4x64xf32>
    %c0_4 = arith.constant 0 : index
    %c1 = arith.constant 1 : index
    %c0_5 = arith.constant 0 : index
    %c0_6 = arith.constant 0 : index
    %5 = vector.load %arg1[%c0_4, %c1, %c0_5, %c0_6] : memref<1x4x4x64xf32, #tpu.memory_space<vmem>>, vector<1x1x4x64xf32>
    %6 = vector.shape_cast %5 : vector<1x1x4x64xf32> to vector<4x64xf32>
    %7 = arith.maximumf %4, %6 : vector<4x64xf32>
    %c0_7 = arith.constant 0 : index
    %c2 = arith.constant 2 : index
    %c0_8 = arith.constant 0 : index
    %c0_9 = arith.constant 0 : index
    %8 = vector.load %arg1[%c0_7, %c2, %c0_8, %c0_9] : memref<1x4x4x64xf32, #tpu.memory_space<vmem>>, vector<1x1x4x64xf32>
    %9 = vector.shape_cast %8 : vector<1x1x4x64xf32> to vector<4x64xf32>
    %c0_10 = arith.constant 0 : index
    %c3 = arith.constant 3 : index
    %c0_11 = arith.constant 0 : index
    %c0_12 = arith.constant 0 : index
    %10 = vector.load %arg1[%c0_10, %c3, %c0_11, %c0_12] : memref<1x4x4x64xf32, #tpu.memory_space<vmem>>, vector<1x1x4x64xf32>
    %11 = vector.shape_cast %10 : vector<1x1x4x64xf32> to vector<4x64xf32>
    %12 = arith.maximumf %9, %11 : vector<4x64xf32>
    %13 = arith.maximumf %7, %12 : vector<4x64xf32>
    %c0_13 = arith.constant 0 : index
    %c9 = arith.constant 9 : index
    %14 = vector.load %arg8[%c0_13, %c9] : memref<4x82xf32, #tpu.memory_space<vmem>>, vector<4x64xf32>
    tpu.vector_store %arg8[%c0_13, %c9], %13 {strides = array<i32>} : memref<4x82xf32, #tpu.memory_space<vmem>>, vector<4x64xf32>,
    %c0_14 = arith.constant 0 : index
    %c0_15 = arith.constant 0 : index
    %15 = vector.load %arg6[%c0_14, %c0_15] : memref<9x64xf32, #tpu.memory_space<vmem>>, vector<1x64xf32>
    %cst = arith.constant 0.000000e+00 : f32
    %16 = vector.broadcast %cst : f32 to vector<1x64xf32>
    %17 = arith.cmpf ogt, %15, %16 : vector<1x64xf32>
    %c1_16 = arith.constant 1 : index
    %c0_17 = arith.constant 0 : index
    %18 = vector.load %arg6[%c1_16, %c0_17] : memref<9x64xf32, #tpu.memory_space<vmem>>, vector<1x64xf32>
    %cst_18 = arith.constant 0.000000e+00 : f32
    %19 = vector.broadcast %cst_18 : f32 to vector<1x64xf32>
    %20 = arith.cmpf ogt, %18, %19 : vector<1x64xf32>
    %c2_19 = arith.constant 2 : index
    %c0_20 = arith.constant 0 : index
    %21 = vector.load %arg6[%c2_19, %c0_20] : memref<9x64xf32, #tpu.memory_space<vmem>>, vector<1x64xf32>
    %cst_21 = arith.constant 0.000000e+00 : f32
    %22 = vector.broadcast %cst_21 : f32 to vector<1x64xf32>
    %23 = arith.cmpf ogt, %21, %22 : vector<1x64xf32>
    %c3_22 = arith.constant 3 : index
    %c0_23 = arith.constant 0 : index
    %24 = vector.load %arg6[%c3_22, %c0_23] : memref<9x64xf32, #tpu.memory_space<vmem>>, vector<1x64xf32>
    %cst_24 = arith.constant 0.000000e+00 : f32
    %25 = vector.broadcast %cst_24 : f32 to vector<1x64xf32>
    %26 = arith.cmpf ogt, %24, %25 : vector<1x64xf32>
    %c4 = arith.constant 4 : index
    %c0_25 = arith.constant 0 : index
    %27 = vector.load %arg6[%c4, %c0_25] : memref<9x64xf32, #tpu.memory_space<vmem>>, vector<1x64xf32>
    %cst_26 = arith.constant 0.000000e+00 : f32
    %28 = vector.broadcast %cst_26 : f32 to vector<1x64xf32>
    %29 = arith.cmpf ogt, %27, %28 : vector<1x64xf32>
    %c5 = arith.constant 5 : index
    %c0_27 = arith.constant 0 : index
    %30 = vector.load %arg6[%c5, %c0_27] : memref<9x64xf32, #tpu.memory_space<vmem>>, vector<1x64xf32>
    %cst_28 = arith.constant 0.000000e+00 : f32
    %31 = vector.broadcast %cst_28 : f32 to vector<1x64xf32>
    %32 = arith.cmpf ogt, %30, %31 : vector<1x64xf32>
    %c6 = arith.constant 6 : index
    %c0_29 = arith.constant 0 : index
    %33 = vector.load %arg6[%c6, %c0_29] : memref<9x64xf32, #tpu.memory_space<vmem>>, vector<1x64xf32>
    %cst_30 = arith.constant 0.000000e+00 : f32
    %34 = vector.broadcast %cst_30 : f32 to vector<1x64xf32>
    %35 = arith.cmpf ogt, %33, %34 : vector<1x64xf32>
    %c7 = arith.constant 7 : index
    %c0_31 = arith.constant 0 : index
    %36 = vector.load %arg6[%c7, %c0_31] : memref<9x64xf32, #tpu.memory_space<vmem>>, vector<1x64xf32>
    %cst_32 = arith.constant 0.000000e+00 : f32
    %37 = vector.broadcast %cst_32 : f32 to vector<1x64xf32>
    %38 = arith.cmpf ogt, %36, %37 : vector<1x64xf32>
    %c8 = arith.constant 8 : index
    %c0_33 = arith.constant 0 : index
    %39 = vector.load %arg6[%c8, %c0_33] : memref<9x64xf32, #tpu.memory_space<vmem>>, vector<1x64xf32>
    %cst_34 = arith.constant 0.000000e+00 : f32
    %40 = vector.broadcast %cst_34 : f32 to vector<1x64xf32>
    %41 = arith.cmpf ogt, %39, %40 : vector<1x64xf32>
    %c0_35 = arith.constant 0 : index
    %c0_36 = arith.constant 0 : index
    %42 = vector.load %arg4[%c0_35, %c0_36] : memref<8x3xf32, #tpu.memory_space<vmem>>, vector<8x1xf32>
    %c0_37 = arith.constant 0 : index
    %c0_38 = arith.constant 0 : index
    %43 = vector.load %arg8[%c0_37, %c0_38] : memref<4x82xf32, #tpu.memory_space<vmem>>, vector<4x64xf32>
    %cst_39 = arith.constant 0.000000e+00 : f32
    %44 = vector.shape_cast %17 : vector<1x64xi1> to vector<1x64xi1>
    %45 = vector.broadcast %44 : vector<1x64xi1> to vector<4x64xi1>
    %46 = vector.broadcast %cst_39 : f32 to vector<4x64xf32>
    %47 = arith.select %45, %43, %46 : vector<4x64xi1>, vector<4x64xf32>
    %c0_40 = arith.constant 0 : index
    %c0_41 = arith.constant 0 : index
    %c0_42 = arith.constant 0 : index
    %48 = vector.load %arg2[%c0_40, %c0_41, %c0_42] : memref<9x8x4xf32, #tpu.memory_space<vmem>>, vector<1x8x4xf32>
    %49 = vector.shape_cast %48 : vector<1x8x4xf32> to vector<8x4xf32>
    %cst_43 = arith.constant dense<0.000000e+00> : vector<8x64xf32>
    %50 = tpu.matmul %49, %47, %cst_43 {dimension_numbers = #tpu.dot_dimension_numbers<[1], [0], [0], [1], [0, 0, 1, 1], [], []>} : vector<8x4xf32>, vector<4x64xf32>, vector<8x64xf32> -> vector<8x64xf32>
    %c0_44 = arith.constant 0 : index
    %c1_45 = arith.constant 1 : index
    %51 = vector.load %arg8[%c0_44, %c1_45] : memref<4x82xf32, #tpu.memory_space<vmem>>, vector<4x64xf32>
    %cst_46 = arith.constant 0.000000e+00 : f32
    %52 = vector.shape_cast %20 : vector<1x64xi1> to vector<1x64xi1>
    %53 = vector.broadcast %52 : vector<1x64xi1> to vector<4x64xi1>
    %54 = vector.broadcast %cst_46 : f32 to vector<4x64xf32>
    %55 = arith.select %53, %51, %54 : vector<4x64xi1>, vector<4x64xf32>
    %c1_47 = arith.constant 1 : index
    %c0_48 = arith.constant 0 : index
    %c0_49 = arith.constant 0 : index
    %56 = vector.load %arg2[%c1_47, %c0_48, %c0_49] : memref<9x8x4xf32, #tpu.memory_space<vmem>>, vector<1x8x4xf32>
    %57 = vector.shape_cast %56 : vector<1x8x4xf32> to vector<8x4xf32>
    %cst_50 = arith.constant dense<0.000000e+00> : vector<8x64xf32>
    %58 = tpu.matmul %57, %55, %cst_50 {dimension_numbers = #tpu.dot_dimension_numbers<[1], [0], [0], [1], [0, 0, 1, 1], [], []>} : vector<8x4xf32>, vector<4x64xf32>, vector<8x64xf32> -> vector<8x64xf32>
    %59 = arith.addf %50, %58 : vector<8x64xf32>
    %c0_51 = arith.constant 0 : index
    %c2_52 = arith.constant 2 : index
    %60 = vector.load %arg8[%c0_51, %c2_52] : memref<4x82xf32, #tpu.memory_space<vmem>>, vector<4x64xf32>
    %cst_53 = arith.constant 0.000000e+00 : f32
    %61 = vector.shape_cast %23 : vector<1x64xi1> to vector<1x64xi1>
    %62 = vector.broadcast %61 : vector<1x64xi1> to vector<4x64xi1>
    %63 = vector.broadcast %cst_53 : f32 to vector<4x64xf32>
    %64 = arith.select %62, %60, %63 : vector<4x64xi1>, vector<4x64xf32>
    %c2_54 = arith.constant 2 : index
    %c0_55 = arith.constant 0 : index
    %c0_56 = arith.constant 0 : index
    %65 = vector.load %arg2[%c2_54, %c0_55, %c0_56] : memref<9x8x4xf32, #tpu.memory_space<vmem>>, vector<1x8x4xf32>
    %66 = vector.shape_cast %65 : vector<1x8x4xf32> to vector<8x4xf32>
    %cst_57 = arith.constant dense<0.000000e+00> : vector<8x64xf32>
    %67 = tpu.matmul %66, %64, %cst_57 {dimension_numbers = #tpu.dot_dimension_numbers<[1], [0], [0], [1], [0, 0, 1, 1], [], []>} : vector<8x4xf32>, vector<4x64xf32>, vector<8x64xf32> -> vector<8x64xf32>
    %68 = arith.addf %59, %67 : vector<8x64xf32>
    %c0_58 = arith.constant 0 : index
    %c8_59 = arith.constant 8 : index
    %69 = vector.load %arg8[%c0_58, %c8_59] : memref<4x82xf32, #tpu.memory_space<vmem>>, vector<4x64xf32>
    %cst_60 = arith.constant 0.000000e+00 : f32
    %70 = vector.shape_cast %26 : vector<1x64xi1> to vector<1x64xi1>
    %71 = vector.broadcast %70 : vector<1x64xi1> to vector<4x64xi1>
    %72 = vector.broadcast %cst_60 : f32 to vector<4x64xf32>
    %73 = arith.select %71, %69, %72 : vector<4x64xi1>, vector<4x64xf32>
    %c3_61 = arith.constant 3 : index
    %c0_62 = arith.constant 0 : index
    %c0_63 = arith.constant 0 : index
    %74 = vector.load %arg2[%c3_61, %c0_62, %c0_63] : memref<9x8x4xf32, #tpu.memory_space<vmem>>, vector<1x8x4xf32>
    %75 = vector.shape_cast %74 : vector<1x8x4xf32> to vector<8x4xf32>
    %cst_64 = arith.constant dense<0.000000e+00> : vector<8x64xf32>
    %76 = tpu.matmul %75, %73, %cst_64 {dimension_numbers = #tpu.dot_dimension_numbers<[1], [0], [0], [1], [0, 0, 1, 1], [], []>} : vector<8x4xf32>, vector<4x64xf32>, vector<8x64xf32> -> vector<8x64xf32>
    %77 = arith.addf %68, %76 : vector<8x64xf32>
    %c0_65 = arith.constant 0 : index
    %c9_66 = arith.constant 9 : index
    %78 = vector.load %arg8[%c0_65, %c9_66] : memref<4x82xf32, #tpu.memory_space<vmem>>, vector<4x64xf32>
    %cst_67 = arith.constant 0.000000e+00 : f32
    %79 = vector.shape_cast %29 : vector<1x64xi1> to vector<1x64xi1>
    %80 = vector.broadcast %79 : vector<1x64xi1> to vector<4x64xi1>
    %81 = vector.broadcast %cst_67 : f32 to vector<4x64xf32>
    %82 = arith.select %80, %78, %81 : vector<4x64xi1>, vector<4x64xf32>
    %c4_68 = arith.constant 4 : index
    %c0_69 = arith.constant 0 : index
    %c0_70 = arith.constant 0 : index
    %83 = vector.load %arg2[%c4_68, %c0_69, %c0_70] : memref<9x8x4xf32, #tpu.memory_space<vmem>>, vector<1x8x4xf32>
    %84 = vector.shape_cast %83 : vector<1x8x4xf32> to vector<8x4xf32>
    %cst_71 = arith.constant dense<0.000000e+00> : vector<8x64xf32>
    %85 = tpu.matmul %84, %82, %cst_71 {dimension_numbers = #tpu.dot_dimension_numbers<[1], [0], [0], [1], [0, 0, 1, 1], [], []>} : vector<8x4xf32>, vector<4x64xf32>, vector<8x64xf32> -> vector<8x64xf32>
    %86 = arith.addf %77, %85 : vector<8x64xf32>
    %c0_72 = arith.constant 0 : index
    %c10 = arith.constant 10 : index
    %87 = vector.load %arg8[%c0_72, %c10] : memref<4x82xf32, #tpu.memory_space<vmem>>, vector<4x64xf32>
    %cst_73 = arith.constant 0.000000e+00 : f32
    %88 = vector.shape_cast %32 : vector<1x64xi1> to vector<1x64xi1>
    %89 = vector.broadcast %88 : vector<1x64xi1> to vector<4x64xi1>
    %90 = vector.broadcast %cst_73 : f32 to vector<4x64xf32>
    %91 = arith.select %89, %87, %90 : vector<4x64xi1>, vector<4x64xf32>
    %c5_74 = arith.constant 5 : index
    %c0_75 = arith.constant 0 : index
    %c0_76 = arith.constant 0 : index
    %92 = vector.load %arg2[%c5_74, %c0_75, %c0_76] : memref<9x8x4xf32, #tpu.memory_space<vmem>>, vector<1x8x4xf32>
    %93 = vector.shape_cast %92 : vector<1x8x4xf32> to vector<8x4xf32>
    %cst_77 = arith.constant dense<0.000000e+00> : vector<8x64xf32>
    %94 = tpu.matmul %93, %91, %cst_77 {dimension_numbers = #tpu.dot_dimension_numbers<[1], [0], [0], [1], [0, 0, 1, 1], [], []>} : vector<8x4xf32>, vector<4x64xf32>, vector<8x64xf32> -> vector<8x64xf32>
    %95 = arith.addf %86, %94 : vector<8x64xf32>
    %c0_78 = arith.constant 0 : index
    %c16 = arith.constant 16 : index
    %96 = vector.load %arg8[%c0_78, %c16] : memref<4x82xf32, #tpu.memory_space<vmem>>, vector<4x64xf32>
    %cst_79 = arith.constant 0.000000e+00 : f32
    %97 = vector.shape_cast %35 : vector<1x64xi1> to vector<1x64xi1>
    %98 = vector.broadcast %97 : vector<1x64xi1> to vector<4x64xi1>
    %99 = vector.broadcast %cst_79 : f32 to vector<4x64xf32>
    %100 = arith.select %98, %96, %99 : vector<4x64xi1>, vector<4x64xf32>
    %c6_80 = arith.constant 6 : index
    %c0_81 = arith.constant 0 : index
    %c0_82 = arith.constant 0 : index
    %101 = vector.load %arg2[%c6_80, %c0_81, %c0_82] : memref<9x8x4xf32, #tpu.memory_space<vmem>>, vector<1x8x4xf32>
    %102 = vector.shape_cast %101 : vector<1x8x4xf32> to vector<8x4xf32>
    %cst_83 = arith.constant dense<0.000000e+00> : vector<8x64xf32>
    %103 = tpu.matmul %102, %100, %cst_83 {dimension_numbers = #tpu.dot_dimension_numbers<[1], [0], [0], [1], [0, 0, 1, 1], [], []>} : vector<8x4xf32>, vector<4x64xf32>, vector<8x64xf32> -> vector<8x64xf32>
    %104 = arith.addf %95, %103 : vector<8x64xf32>
    %c0_84 = arith.constant 0 : index
    %c17 = arith.constant 17 : index
    %105 = vector.load %arg8[%c0_84, %c17] : memref<4x82xf32, #tpu.memory_space<vmem>>, vector<4x64xf32>
    %cst_85 = arith.constant 0.000000e+00 : f32
    %106 = vector.shape_cast %38 : vector<1x64xi1> to vector<1x64xi1>
    %107 = vector.broadcast %106 : vector<1x64xi1> to vector<4x64xi1>
    %108 = vector.broadcast %cst_85 : f32 to vector<4x64xf32>
    %109 = arith.select %107, %105, %108 : vector<4x64xi1>, vector<4x64xf32>
    %c7_86 = arith.constant 7 : index
    %c0_87 = arith.constant 0 : index
    %c0_88 = arith.constant 0 : index
    %110 = vector.load %arg2[%c7_86, %c0_87, %c0_88] : memref<9x8x4xf32, #tpu.memory_space<vmem>>, vector<1x8x4xf32>
    %111 = vector.shape_cast %110 : vector<1x8x4xf32> to vector<8x4xf32>
    %cst_89 = arith.constant dense<0.000000e+00> : vector<8x64xf32>
    %112 = tpu.matmul %111, %109, %cst_89 {dimension_numbers = #tpu.dot_dimension_numbers<[1], [0], [0], [1], [0, 0, 1, 1], [], []>} : vector<8x4xf32>, vector<4x64xf32>, vector<8x64xf32> -> vector<8x64xf32>
    %113 = arith.addf %104, %112 : vector<8x64xf32>
    %c0_90 = arith.constant 0 : index
    %c18 = arith.constant 18 : index
    %114 = vector.load %arg8[%c0_90, %c18] : memref<4x82xf32, #tpu.memory_space<vmem>>, vector<4x64xf32>
    %cst_91 = arith.constant 0.000000e+00 : f32
    %115 = vector.shape_cast %41 : vector<1x64xi1> to vector<1x64xi1>
    %116 = vector.broadcast %115 : vector<1x64xi1> to vector<4x64xi1>
    %117 = vector.broadcast %cst_91 : f32 to vector<4x64xf32>
    %118 = arith.select %116, %114, %117 : vector<4x64xi1>, vector<4x64xf32>
    %c8_92 = arith.constant 8 : index
    %c0_93 = arith.constant 0 : index
    %c0_94 = arith.constant 0 : index
    %119 = vector.load %arg2[%c8_92, %c0_93, %c0_94] : memref<9x8x4xf32, #tpu.memory_space<vmem>>, vector<1x8x4xf32>
    %120 = vector.shape_cast %119 : vector<1x8x4xf32> to vector<8x4xf32>
    %cst_95 = arith.constant dense<0.000000e+00> : vector<8x64xf32>
    %121 = tpu.matmul %120, %118, %cst_95 {dimension_numbers = #tpu.dot_dimension_numbers<[1], [0], [0], [1], [0, 0, 1, 1], [], []>} : vector<8x4xf32>, vector<4x64xf32>, vector<8x64xf32> -> vector<8x64xf32>
    %122 = arith.addf %113, %121 : vector<8x64xf32>
    %123 = vector.broadcast %42 : vector<8x1xf32> to vector<8x64xf32>
    %124 = arith.addf %122, %123 : vector<8x64xf32>
    %cst_96 = arith.constant 0.000000e+00 : f32
    %125 = vector.broadcast %cst_96 : f32 to vector<8x64xf32>
    %126 = arith.maximumf %124, %125 : vector<8x64xf32>
    %c0_97 = arith.constant 0 : index
    %c9_98 = arith.constant 9 : index
    %127 = vector.load %arg9[%c0_97, %c9_98] : memref<8x82xf32, #tpu.memory_space<vmem>>, vector<8x64xf32>
    tpu.vector_store %arg9[%c0_97, %c9_98], %126 {strides = array<i32>} : memref<8x82xf32, #tpu.memory_space<vmem>>, vector<8x64xf32>,
    %c0_99 = arith.constant 0 : index
    %c0_100 = arith.constant 0 : index
    %128 = vector.load %arg9[%c0_99, %c0_100] : memref<8x82xf32, #tpu.memory_space<vmem>>, vector<8x64xf32>
    %cst_101 = arith.constant 0.000000e+00 : f32
    %129 = vector.shape_cast %17 : vector<1x64xi1> to vector<1x64xi1>
    %130 = vector.broadcast %129 : vector<1x64xi1> to vector<8x64xi1>
    %131 = vector.broadcast %cst_101 : f32 to vector<8x64xf32>
    %132 = arith.select %130, %128, %131 : vector<8x64xi1>, vector<8x64xf32>
    %c0_102 = arith.constant 0 : index
    %c0_103 = arith.constant 0 : index
    %c0_104 = arith.constant 0 : index
    %133 = vector.load %arg3[%c0_102, %c0_103, %c0_104] : memref<9x8x8xf32, #tpu.memory_space<vmem>>, vector<1x8x8xf32>
    %134 = vector.shape_cast %133 : vector<1x8x8xf32> to vector<8x8xf32>
    %cst_105 = arith.constant dense<0.000000e+00> : vector<8x64xf32>
    %135 = tpu.matmul %134, %132, %cst_105 {dimension_numbers = #tpu.dot_dimension_numbers<[1], [0], [0], [1], [0, 0, 1, 1], [], []>} : vector<8x8xf32>, vector<8x64xf32>, vector<8x64xf32> -> vector<8x64xf32>
    %c0_106 = arith.constant 0 : index
    %c1_107 = arith.constant 1 : index
    %136 = vector.load %arg9[%c0_106, %c1_107] : memref<8x82xf32, #tpu.memory_space<vmem>>, vector<8x64xf32>
    %cst_108 = arith.constant 0.000000e+00 : f32
    %137 = vector.shape_cast %20 : vector<1x64xi1> to vector<1x64xi1>
    %138 = vector.broadcast %137 : vector<1x64xi1> to vector<8x64xi1>
    %139 = vector.broadcast %cst_108 : f32 to vector<8x64xf32>
    %140 = arith.select %138, %136, %139 : vector<8x64xi1>, vector<8x64xf32>
    %c1_109 = arith.constant 1 : index
    %c0_110 = arith.constant 0 : index
    %c0_111 = arith.constant 0 : index
    %141 = vector.load %arg3[%c1_109, %c0_110, %c0_111] : memref<9x8x8xf32, #tpu.memory_space<vmem>>, vector<1x8x8xf32>
    %142 = vector.shape_cast %141 : vector<1x8x8xf32> to vector<8x8xf32>
    %cst_112 = arith.constant dense<0.000000e+00> : vector<8x64xf32>
    %143 = tpu.matmul %142, %140, %cst_112 {dimension_numbers = #tpu.dot_dimension_numbers<[1], [0], [0], [1], [0, 0, 1, 1], [], []>} : vector<8x8xf32>, vector<8x64xf32>, vector<8x64xf32> -> vector<8x64xf32>
    %144 = arith.addf %135, %143 : vector<8x64xf32>
    %c0_113 = arith.constant 0 : index
    %c2_114 = arith.constant 2 : index
    %145 = vector.load %arg9[%c0_113, %c2_114] : memref<8x82xf32, #tpu.memory_space<vmem>>, vector<8x64xf32>
    %cst_115 = arith.constant 0.000000e+00 : f32
    %146 = vector.shape_cast %23 : vector<1x64xi1> to vector<1x64xi1>
    %147 = vector.broadcast %146 : vector<1x64xi1> to vector<8x64xi1>
    %148 = vector.broadcast %cst_115 : f32 to vector<8x64xf32>
    %149 = arith.select %147, %145, %148 : vector<8x64xi1>, vector<8x64xf32>
    %c2_116 = arith.constant 2 : index
    %c0_117 = arith.constant 0 : index
    %c0_118 = arith.constant 0 : index
    %150 = vector.load %arg3[%c2_116, %c0_117, %c0_118] : memref<9x8x8xf32, #tpu.memory_space<vmem>>, vector<1x8x8xf32>
    %151 = vector.shape_cast %150 : vector<1x8x8xf32> to vector<8x8xf32>
    %cst_119 = arith.constant dense<0.000000e+00> : vector<8x64xf32>
    %152 = tpu.matmul %151, %149, %cst_119 {dimension_numbers = #tpu.dot_dimension_numbers<[1], [0], [0], [1], [0, 0, 1, 1], [], []>} : vector<8x8xf32>, vector<8x64xf32>, vector<8x64xf32> -> vector<8x64xf32>
    %153 = arith.addf %144, %152 : vector<8x64xf32>
    %c0_120 = arith.constant 0 : index
    %c8_121 = arith.constant 8 : index
    %154 = vector.load %arg9[%c0_120, %c8_121] : memref<8x82xf32, #tpu.memory_space<vmem>>, vector<8x64xf32>
    %cst_122 = arith.constant 0.000000e+00 : f32
    %155 = vector.shape_cast %26 : vector<1x64xi1> to vector<1x64xi1>
    %156 = vector.broadcast %155 : vector<1x64xi1> to vector<8x64xi1>
    %157 = vector.broadcast %cst_122 : f32 to vector<8x64xf32>
    %158 = arith.select %156, %154, %157 : vector<8x64xi1>, vector<8x64xf32>
    %c3_123 = arith.constant 3 : index
    %c0_124 = arith.constant 0 : index
    %c0_125 = arith.constant 0 : index
    %159 = vector.load %arg3[%c3_123, %c0_124, %c0_125] : memref<9x8x8xf32, #tpu.memory_space<vmem>>, vector<1x8x8xf32>
    %160 = vector.shape_cast %159 : vector<1x8x8xf32> to vector<8x8xf32>
    %cst_126 = arith.constant dense<0.000000e+00> : vector<8x64xf32>
    %161 = tpu.matmul %160, %158, %cst_126 {dimension_numbers = #tpu.dot_dimension_numbers<[1], [0], [0], [1], [0, 0, 1, 1], [], []>} : vector<8x8xf32>, vector<8x64xf32>, vector<8x64xf32> -> vector<8x64xf32>
    %162 = arith.addf %153, %161 : vector<8x64xf32>
    %c0_127 = arith.constant 0 : index
    %c9_128 = arith.constant 9 : index
    %163 = vector.load %arg9[%c0_127, %c9_128] : memref<8x82xf32, #tpu.memory_space<vmem>>, vector<8x64xf32>
    %cst_129 = arith.constant 0.000000e+00 : f32
    %164 = vector.shape_cast %29 : vector<1x64xi1> to vector<1x64xi1>
    %165 = vector.broadcast %164 : vector<1x64xi1> to vector<8x64xi1>
    %166 = vector.broadcast %cst_129 : f32 to vector<8x64xf32>
    %167 = arith.select %165, %163, %166 : vector<8x64xi1>, vector<8x64xf32>
    %c4_130 = arith.constant 4 : index
    %c0_131 = arith.constant 0 : index
    %c0_132 = arith.constant 0 : index
    %168 = vector.load %arg3[%c4_130, %c0_131, %c0_132] : memref<9x8x8xf32, #tpu.memory_space<vmem>>, vector<1x8x8xf32>
    %169 = vector.shape_cast %168 : vector<1x8x8xf32> to vector<8x8xf32>
    %cst_133 = arith.constant dense<0.000000e+00> : vector<8x64xf32>
    %170 = tpu.matmul %169, %167, %cst_133 {dimension_numbers = #tpu.dot_dimension_numbers<[1], [0], [0], [1], [0, 0, 1, 1], [], []>} : vector<8x8xf32>, vector<8x64xf32>, vector<8x64xf32> -> vector<8x64xf32>
    %171 = arith.addf %162, %170 : vector<8x64xf32>
    %c0_134 = arith.constant 0 : index
    %c10_135 = arith.constant 10 : index
    %172 = vector.load %arg9[%c0_134, %c10_135] : memref<8x82xf32, #tpu.memory_space<vmem>>, vector<8x64xf32>
    %cst_136 = arith.constant 0.000000e+00 : f32
    %173 = vector.shape_cast %32 : vector<1x64xi1> to vector<1x64xi1>
    %174 = vector.broadcast %173 : vector<1x64xi1> to vector<8x64xi1>
    %175 = vector.broadcast %cst_136 : f32 to vector<8x64xf32>
    %176 = arith.select %174, %172, %175 : vector<8x64xi1>, vector<8x64xf32>
    %c5_137 = arith.constant 5 : index
    %c0_138 = arith.constant 0 : index
    %c0_139 = arith.constant 0 : index
    %177 = vector.load %arg3[%c5_137, %c0_138, %c0_139] : memref<9x8x8xf32, #tpu.memory_space<vmem>>, vector<1x8x8xf32>
    %178 = vector.shape_cast %177 : vector<1x8x8xf32> to vector<8x8xf32>
    %cst_140 = arith.constant dense<0.000000e+00> : vector<8x64xf32>
    %179 = tpu.matmul %178, %176, %cst_140 {dimension_numbers = #tpu.dot_dimension_numbers<[1], [0], [0], [1], [0, 0, 1, 1], [], []>} : vector<8x8xf32>, vector<8x64xf32>, vector<8x64xf32> -> vector<8x64xf32>
    %180 = arith.addf %171, %179 : vector<8x64xf32>
    %c0_141 = arith.constant 0 : index
    %c16_142 = arith.constant 16 : index
    %181 = vector.load %arg9[%c0_141, %c16_142] : memref<8x82xf32, #tpu.memory_space<vmem>>, vector<8x64xf32>
    %cst_143 = arith.constant 0.000000e+00 : f32
    %182 = vector.shape_cast %35 : vector<1x64xi1> to vector<1x64xi1>
    %183 = vector.broadcast %182 : vector<1x64xi1> to vector<8x64xi1>
    %184 = vector.broadcast %cst_143 : f32 to vector<8x64xf32>
    %185 = arith.select %183, %181, %184 : vector<8x64xi1>, vector<8x64xf32>
    %c6_144 = arith.constant 6 : index
    %c0_145 = arith.constant 0 : index
    %c0_146 = arith.constant 0 : index
    %186 = vector.load %arg3[%c6_144, %c0_145, %c0_146] : memref<9x8x8xf32, #tpu.memory_space<vmem>>, vector<1x8x8xf32>
    %187 = vector.shape_cast %186 : vector<1x8x8xf32> to vector<8x8xf32>
    %cst_147 = arith.constant dense<0.000000e+00> : vector<8x64xf32>
    %188 = tpu.matmul %187, %185, %cst_147 {dimension_numbers = #tpu.dot_dimension_numbers<[1], [0], [0], [1], [0, 0, 1, 1], [], []>} : vector<8x8xf32>, vector<8x64xf32>, vector<8x64xf32> -> vector<8x64xf32>
    %189 = arith.addf %180, %188 : vector<8x64xf32>
    %c0_148 = arith.constant 0 : index
    %c17_149 = arith.constant 17 : index
    %190 = vector.load %arg9[%c0_148, %c17_149] : memref<8x82xf32, #tpu.memory_space<vmem>>, vector<8x64xf32>
    %cst_150 = arith.constant 0.000000e+00 : f32
    %191 = vector.shape_cast %38 : vector<1x64xi1> to vector<1x64xi1>
    %192 = vector.broadcast %191 : vector<1x64xi1> to vector<8x64xi1>
    %193 = vector.broadcast %cst_150 : f32 to vector<8x64xf32>
    %194 = arith.select %192, %190, %193 : vector<8x64xi1>, vector<8x64xf32>
    %c7_151 = arith.constant 7 : index
    %c0_152 = arith.constant 0 : index
    %c0_153 = arith.constant 0 : index
    %195 = vector.load %arg3[%c7_151, %c0_152, %c0_153] : memref<9x8x8xf32, #tpu.memory_space<vmem>>, vector<1x8x8xf32>
    %196 = vector.shape_cast %195 : vector<1x8x8xf32> to vector<8x8xf32>
    %cst_154 = arith.constant dense<0.000000e+00> : vector<8x64xf32>
    %197 = tpu.matmul %196, %194, %cst_154 {dimension_numbers = #tpu.dot_dimension_numbers<[1], [0], [0], [1], [0, 0, 1, 1], [], []>} : vector<8x8xf32>, vector<8x64xf32>, vector<8x64xf32> -> vector<8x64xf32>
    %198 = arith.addf %189, %197 : vector<8x64xf32>
    %c0_155 = arith.constant 0 : index
    %c18_156 = arith.constant 18 : index
    %199 = vector.load %arg9[%c0_155, %c18_156] : memref<8x82xf32, #tpu.memory_space<vmem>>, vector<8x64xf32>
    %cst_157 = arith.constant 0.000000e+00 : f32
    %200 = vector.shape_cast %41 : vector<1x64xi1> to vector<1x64xi1>
    %201 = vector.broadcast %200 : vector<1x64xi1> to vector<8x64xi1>
    %202 = vector.broadcast %cst_157 : f32 to vector<8x64xf32>
    %203 = arith.select %201, %199, %202 : vector<8x64xi1>, vector<8x64xf32>
    %c8_158 = arith.constant 8 : index
    %c0_159 = arith.constant 0 : index
    %c0_160 = arith.constant 0 : index
    %204 = vector.load %arg3[%c8_158, %c0_159, %c0_160] : memref<9x8x8xf32, #tpu.memory_space<vmem>>, vector<1x8x8xf32>
    %205 = vector.shape_cast %204 : vector<1x8x8xf32> to vector<8x8xf32>
    %cst_161 = arith.constant dense<0.000000e+00> : vector<8x64xf32>
    %206 = tpu.matmul %205, %203, %cst_161 {dimension_numbers = #tpu.dot_dimension_numbers<[1], [0], [0], [1], [0, 0, 1, 1], [], []>} : vector<8x8xf32>, vector<8x64xf32>, vector<8x64xf32> -> vector<8x64xf32>
    %207 = arith.addf %198, %206 : vector<8x64xf32>
    %c0_162 = arith.constant 0 : index
    %c1_163 = arith.constant 1 : index
    %208 = vector.load %arg4[%c0_162, %c1_163] : memref<8x3xf32, #tpu.memory_space<vmem>>, vector<8x1xf32>
    %c0_164 = arith.constant 0 : index
    %c2_165 = arith.constant 2 : index
    %209 = vector.load %arg4[%c0_164, %c2_165] : memref<8x3xf32, #tpu.memory_space<vmem>>, vector<8x1xf32>
    %c0_166 = arith.constant 0 : index
    %c0_167 = arith.constant 0 : index
    %210 = vector.load %arg5[%c0_166, %c0_167] : memref<8x64xf32, #tpu.memory_space<vmem>>, vector<8x64xf32>
    %211 = arith.addf %207, %210 : vector<8x64xf32>
    %cst_168 = arith.constant 0.000000e+00 : f32
    %212 = vector.broadcast %cst_168 : f32 to vector<8x64xf32>
    %213 = arith.maximumf %211, %212 : vector<8x64xf32>
    %214 = vector.broadcast %208 : vector<8x1xf32> to vector<8x64xf32>
    %215 = arith.mulf %213, %214 : vector<8x64xf32>
    %216 = vector.broadcast %209 : vector<8x1xf32> to vector<8x64xf32>
    %217 = arith.addf %215, %216 : vector<8x64xf32>
    %c0_169 = arith.constant 0 : index
    %c0_170 = arith.constant 0 : index
    %c0_171 = arith.constant 0 : index
    %218 = vector.load %arg7[%c0_169, %c0_170, %c0_171] : memref<1x8x64xf32, #tpu.memory_space<vmem>>, vector<1x8x64xf32>
    %219 = vector.shape_cast %218 : vector<1x8x64xf32> to vector<8x64xf32>
    %220 = vector.shape_cast %217 : vector<8x64xf32> to vector<1x8x64xf32>
    tpu.vector_store %arg7[%c0_169, %c0_170, %c0_171], %220 {strides = array<i32>} : memref<1x8x64xf32, #tpu.memory_space<vmem>>, vector<1x8x64xf32>,
    return
  }
  func.func @transform_0(%arg0: i32) -> (i32, i32, i32, i32) {
    %c0_i32 = arith.constant 0 : i32
    %c0_i32_0 = arith.constant 0 : i32
    %c0_i32_1 = arith.constant 0 : i32
    %c0_i32_2 = arith.constant 0 : i32
    return %arg0, %c0_i32, %c0_i32_0, %c0_i32_1 : i32, i32, i32, i32
  }
  func.func @transform_1(%arg0: i32) -> (i32, i32, i32) {
    %c0_i32 = arith.constant 0 : i32
    %c0_i32_0 = arith.constant 0 : i32
    %c0_i32_1 = arith.constant 0 : i32
    %c0_i32_2 = arith.constant 0 : i32
    return %c0_i32, %c0_i32_0, %c0_i32_1 : i32, i32, i32
  }
  func.func @transform_2(%arg0: i32) -> (i32, i32, i32) {
    %c0_i32 = arith.constant 0 : i32
    %c0_i32_0 = arith.constant 0 : i32
    %c0_i32_1 = arith.constant 0 : i32
    %c0_i32_2 = arith.constant 0 : i32
    return %c0_i32, %c0_i32_0, %c0_i32_1 : i32, i32, i32
  }
  func.func @transform_3(%arg0: i32) -> (i32, i32) {
    %c0_i32 = arith.constant 0 : i32
    %c0_i32_0 = arith.constant 0 : i32
    %c0_i32_1 = arith.constant 0 : i32
    return %c0_i32, %c0_i32_0 : i32, i32
  }
  func.func @transform_4(%arg0: i32) -> (i32, i32) {
    %c0_i32 = arith.constant 0 : i32
    %c0_i32_0 = arith.constant 0 : i32
    %c0_i32_1 = arith.constant 0 : i32
    return %c0_i32, %c0_i32_0 : i32, i32
  }
  func.func @transform_5(%arg0: i32) -> (i32, i32) {
    %c0_i32 = arith.constant 0 : i32
    %c0_i32_0 = arith.constant 0 : i32
    %c0_i32_1 = arith.constant 0 : i32
    return %c0_i32, %c0_i32_0 : i32, i32
  }
  func.func @transform_6(%arg0: i32) -> (i32, i32, i32) {
    %c0_i32 = arith.constant 0 : i32
    %c0_i32_0 = arith.constant 0 : i32
    %c0_i32_1 = arith.constant 0 : i32
    return %arg0, %c0_i32, %c0_i32_0 : i32, i32, i32
  }
}

</mosaic_0001>

<bundles_post_ra>
// kernel: down_forward.1
= control target key start
LH: loop header
LB: loop body
LE: loop exit
PB: predicated region body
PF: predicated region fallthrough
CT: control target
= control target key end

     0   :  { %s1112_s21 = smov 0   ;;  %s1351_s0 = inlined_call_operand.vmem [shape: f32[2,4,4,64], index: 0, kind: input, shape index: {}]   ;;  %s1352_s1 = inlined_call_operand.vmem [shape: f32[9,8,4], index: 1, kind: input, shape index: {}]   ;;  %s1353_s2 = inlined_call_operand.vmem [shape: f32[9,8,8], index: 2, kind: input, shape index: {}]   ;;  %s1354_s3 = inlined_call_operand.vmem [shape: f32[8,3], index: 3, kind: input, shape index: {}]   ;;  %s1355_s4 = inlined_call_operand.vmem [shape: f32[8,64], index: 4, kind: input, shape index: {}]   ;;  %s1356_s5 = inlined_call_operand.vmem [shape: f32[9,64], index: 5, kind: input, shape index: {}]   ;;  %s1357_s6 = inlined_call_operand.vmem [shape: f32[2,8,64], index: 6, kind: output, shape index: {}]  }
   0x1 LB: > { %s965_s22 = sadd.s32 4294967295, %s1062_s21   ;;  %p969_p0 = scmp.ge.s32.totalorder %s1062_s21, 1  ;;  %s1062_s21 = sphi %s1112_s21, %s16_s21  }
   0x2   : > { %p212_p1 = scmp.lt.s32.totalorder %s1062_s21, 3 }
   0x4   : > { %p213_p2 = pnand %p969_p0, %p212_p1 }
   0x5   : > { %p241_p3 = scmp.lt.s32.totalorder (!%p213_p2), %s965_s22, 1  ;;  %p973_p4 = scmp.ne.s32.totalorder (!%p213_p2), %s965_s22, 0 }
   0x6   : > { %216 = sbr.rel (%p213_p2) target bundleno = 816 (0x330), region = 44 }
   0xb   : > { %s242_s23 = scalar_select %p241_p3, %s965_s22, 1 }
   0xc   : > { %253 = sbr.rel (%p973_p4) target bundleno = 20 (0x14), region = 48 }
   0xd   : > { %s1031_s24 = sshll.u32 %s242_s23, 4  ;;  %s972_s25 = sshll.u32 %s242_s23, 3 }
   0xe   : > { %s245_s28 = scalar_lea.vmem %s1351_s0, %s1031_s24  ;;  %s1126_s7 = scalar_lea.vmem %s1357_s6, %s972_s25 }
  0x11   : > { %vm254_vm0 = vcmask 666624   ;;  %vm256_vm1 = vcmask 670720   ;;  %v1064_v0 = vmov 0.0  }
  0x12   : > { %255 = vst.msk [vmem:[#allocation2] sm:$0xf] %vm254_vm0, %v1064_v0 }
  0x13   : > { %257 = vst.msk [vmem:[#allocation3] sm:$0xff] %vm256_vm1, %v1064_v0 }
  0x14 PF: > { %v258_v1 = vld [vmem:[%s245_s28] sm:$0xf]  ;;  %v974_v2 = vld [vmem:[%s245_s28 + $0x4] sm:$0xf]  ;;  %v975_v3 = vld [vmem:[%s245_s28 + $0x8] sm:$0xf] }
  0x15   : > { %v261_v4 = vmax.f32 %v258_v1, %v974_v2  ;;  %v976_v5 = vld [vmem:[%s245_s28 + $0xc] sm:$0xf]  ;;  %s1065_s8 = smov 9   ;;  %v1066_v8 = vmov 0   ;;  %v274_v9 = vld [vmem:[%s1356_s5] sm:$0x1] }
  0x16   : > { %v266_v6 = vmax.f32 %v975_v3, %v976_v5  ;;  %1053 = vset.pattern.permute.xlu0 %v1066_v8  ;;  %vm275_vm2 = vcmp.gt.f32.partialorder %v274_v9, 0.0  ;;  %vm272_vm3 = vcmask 592968   ;;  %vm313_vm5 = vcmask 1043456   ;;  %s1067_s11 = smov 112   ;;  %s1068_s12 = smov 127   ;;  %v298_v16 = vld [vmem:[%s1352_s1] sm:$0xff] }
  0x17   : > { %v294_v10 = vsel %vm275_vm2, 1, %v1066_v8  ;;  %s1069_s13 = smov 126   ;;  %s1070_s14 = smov 119   ;;  %vm309_vm6 = vcmask 31744   ;;  %v276_v18 = vld [vmem:[%s1356_s5 + $0x1] sm:$0x1] }
  0x18   : > { %v267_v7 = vmax.f32 %v261_v4, %v266_v6  ;;  %v295_v12 = vperm.slane %v294_v10, 0  ;;  %s1071_s15 = smov 120   ;;  %s1072_s16 = smov 111   ;;  %v282_v19 = vld [vmem:[%s1356_s5 + $0x4] sm:$0x1]  ;;  %vm277_vm7 = vcmp.gt.f32.partialorder %v276_v18, 0.0 }
  0x19   : > { %s1073_s17 = smov 110   ;;  %s1074_s18 = smov 118   ;;  %v278_v20 = vld [vmem:[%s1356_s5 + $0x2] sm:$0x1]  ;;  %v286_v21 = vld [vmem:[%s1356_s5 + $0x6] sm:$0x1] }
  0x1a   : > { %269 = vrot.lane.b32.xlu0 %v267_v7, %s1065_s8  ;;  %vm1134_vm4 = vcmp.eq.s32.totalorder %v295_v12, 1  ;;  %v290_v22 = vld [vmem:[%s1356_s5 + $0x8] sm:$0x1]  ;;  %v1171_v23 = vld [vmem:[%s1354_s3] sm:$0xff]  ;;  %vm283_vm8 = vcmp.gt.f32.partialorder %v282_v19, 0.0  ;;  %vm279_vm9 = vcmp.gt.f32.partialorder %v278_v20, 0.0 }
  0x1b   : > { %vm287_vm10 = vcmp.gt.f32.partialorder %v286_v21, 0.0  ;;  %vm291_vm11 = vcmp.gt.f32.partialorder %v290_v22, 0.0  ;;  %v299_v25 = vsel %vm277_vm7, 1, %v1066_v8  ;;  %v435_v26 = vsel %vm283_vm8, 1, %v1066_v8  ;;  %v280_v29 = vld [vmem:[%s1356_s5 + $0x3] sm:$0x1] }
  0x1c   : > { %v363_v27 = vsel %vm279_vm9, 1, %v1066_v8  ;;  %v507_v28 = vsel %vm287_vm10, 1, %v1066_v8  ;;  %v579_v30 = vsel %vm291_vm11, 1, %v1066_v8  ;;  %v300_v31 = vperm.slane %v299_v25, 0  ;;  %v288_v32 = vld [vmem:[%s1356_s5 + $0x7] sm:$0x1] }
  0x1d   : > { %v436_v33 = vperm.slane %v435_v26, 0  ;;  %v364_v34 = vperm.slane %v363_v27, 0  ;;  %v508_v35 = vperm.slane %v507_v28, 0  ;;  %vm281_vm12 = vcmp.gt.f32.partialorder %v280_v29, 0.0  ;;  %v977_v48 = vld [vmem:[%s1352_s1 + $0x8] sm:$0xff]  ;;  %v982_v52 = vld [vmem:[%s1352_s1 + $0x10] sm:$0xff] }
  0x1e   : > { %v580_v36 = vperm.slane %v579_v30, 0  ;;  %vm289_vm13 = vcmp.gt.f32.partialorder %v288_v32, 0.0  ;;  %vm1185_vm14 = vcmp.eq.s32.totalorder %v300_v31, 1  ;;  %v399_v40 = vsel %vm281_vm12, 1, %v1066_v8  ;;  %v284_v49 = vld [vmem:[%s1356_s5 + $0x5] sm:$0x1] }
  0x1f   : > { %vm1189_vm15 = vcmp.eq.s32.totalorder %v436_v33, 1  ;;  %vm1193_vm0 = vcmp.eq.s32.totalorder %v364_v34, 1  ;;  %vm1198_vm1 = vcmp.eq.s32.totalorder %v508_v35, 1  ;;  %v543_v43 = vsel %vm289_vm13, 1, %v1066_v8  ;;  %v985_v61 = vld [vmem:[%s1352_s1 + $0x18] sm:$0xff]  ;;  %v988_v0 = vld [vmem:[%s1352_s1 + $0x20] sm:$0xff] }
  0x20   : > { %vm1203_vm2 = vcmp.eq.s32.totalorder %v580_v36, 1  ;;  %v400_v53 = vperm.slane %v399_v40, 0  ;;  %v544_v55 = vperm.slane %v543_v43, 0  ;;  %v994_v3 = vld [vmem:[%s1352_s1 + $0x30] sm:$0xff]  ;;  %v997_v6 = vld [vmem:[%s1352_s1 + $0x38] sm:$0xff]  ;;  %v991_v7 = vld [vmem:[%s1352_s1 + $0x28] sm:$0xff] }
  0x21   : > { %v1000_v9 = vld [vmem:[%s1352_s1 + $0x40] sm:$0xff]  ;;  %v1008_v13 = vld [vmem:[%s1353_s2 + $0x10] sm:$0xff]  ;;  %v1017_v36 = vld [vmem:[%s1353_s2 + $0x28] sm:$0xff]  ;;  %v1076_v43 = vmov 1  }
  0x22   : > { %vm1233_vm7 = vcmp.eq.s32.totalorder %v400_v53, 1  ;;  %vm1237_vm8 = vcmp.eq.s32.totalorder %v544_v55, 1  ;;  %v630_v34 = vld [vmem:[%s1353_s2] sm:$0xff]  ;;  %1054 = vset.pattern.permute.xlu2 %v1076_v43  ;;  %v1011_v39 = vld [vmem:[%s1353_s2 + $0x18] sm:$0xff] }
  0x8c   : > { %v270_v11 = vpop.permute.xlu0 %269 }
  0x8d   : > { %273 = vst.msk [vmem:[#allocation2] sm:$0xf] %vm272_vm3, %v270_v11  ;;  %vm285_vm3 = vcmp.gt.f32.partialorder %v284_v49, 0.0  ;;  %v1023_v49 = vld [vmem:[%s1353_s2 + $0x38] sm:$0xff] }
  0x8e   : > { %v471_v59 = vsel %vm285_vm3, 1, %v1066_v8 }
  0x8f   : > { %v472_v2 = vperm.slane %v471_v59, 0 }
  0x91   : > { %vm1260_vm9 = vcmp.eq.s32.totalorder %v472_v2, 1 }
  0x94   : > { %v293_v14 = vld [vmem:[#allocation2] sm:$0xf] }
  0x95   : > { %510 = vrot.lane.b32.xlu2 %v293_v14, %s1067_s11  ;;  %303 = vrot.lane.b32.xlu1 %v293_v14, %s1068_s12  ;;  %v297_v15 = vsel %vm1134_vm4, %v293_v14, 0.0 }
  0x96   : > { %366 = vrot.lane.b32.xlu0 %v293_v14, %s1069_s13  ;;  %980 = vmatpush.msk.msra.mxu1 %vm313_vm5, %v297_v15 }
  0x97   : > { %981 = vmatmul.msk.f32.vlgmr.msra.gmra.mxu1 %vm309_vm6, %v298_v16 }
  0x9d   : > { %438 = vrot.lane.b32.xlu2 %v293_v14, %s1070_s14  ;;  %402 = vrot.lane.b32.xlu1 %v293_v14, %s1071_s15 }
  0x9e   : > { %546 = vrot.lane.b32.xlu0 %v293_v14, %s1072_s16 }
  0xa5   : > { %582 = vrot.lane.b32.xlu2 %v293_v14, %s1073_s17  ;;  %474 = vrot.lane.b32.xlu1 %v293_v14, %s1074_s18 }
  0xa6   : > { %617 = vperm.xlu0 %1053, %v1171_v23  }
  0xef   : > { %v511_v17 = vpop.permute.xlu2 %510 }
  0xf0   : > { %v513_v54 = vsel %vm1198_vm1, %v511_v17, 0.0 }
  0xf7   : > { %v439_v24 = vpop.permute.xlu2 %438 }
  0xf8   : > { %v441_v50 = vsel %vm1189_vm15, %v439_v24, 0.0 }
  0xff   : > { %v583_v45 = vpop.permute.xlu2 %582 }
 0x100   : > { %v585_v56 = vsel %vm1203_vm2, %v583_v45, 0.0 }
 0x107   : > { %v304_v42 = vpop.permute.xlu1 %303 }
 0x108   : > { %v367_v46 = vpop.permute.xlu0 %366  ;;  %v306_v47 = vsel %vm1185_vm14, %v304_v42, 0.0  ;;  %v1075_v42 = vmov 2  }
 0x109   : > { %978 = vmatpush.msk.msra.mxu0 %vm313_vm5, %v306_v47  ;;  %v369_v51 = vsel %vm1193_vm0, %v367_v46, 0.0  ;;  %1055 = vset.pattern.permute.xlu0 %v1075_v42  ;;  %v1003_v47 = vld [vmem:[%s1353_s2 + $0x8] sm:$0xff] }
 0x10a   : > { %983 = vmatpush.msk.msra.mxu2 %vm313_vm5, %v369_v51  ;;  %979 = vmatmul.msk.f32.vlgmr.msra.gmra.mxu0 %vm309_vm6, %v977_v48  ;;  %v1014_v51 = vld [vmem:[%s1353_s2 + $0x20] sm:$0xff] }
 0x10b   : > { %989 = vmatpush.msk.msrb.mxu0 %vm313_vm5, %v441_v50  ;;  %984 = vmatmul.msk.f32.vlgmr.msra.gmra.mxu2 %vm309_vm6, %v982_v52  ;;  %v1026_v52 = vld [vmem:[%s1353_s2 + $0x40] sm:$0xff] }
 0x10c   : > { %995 = vmatpush.msk.msrb.mxu2 %vm313_vm5, %v513_v54 }
 0x10d   : > { %1001 = vmatpush.msk.msra.mxu0 %vm313_vm5, %v585_v56 }
 0x10f   : > { %v403_v60 = vpop.permute.xlu1 %402 }
 0x110   : > { %v547_v62 = vpop.permute.xlu0 %546  ;;  %v405_v63 = vsel %vm1233_vm7, %v403_v60, 0.0 }
 0x111   : > { %v549_v1 = vsel %vm1237_vm8, %v547_v62, 0.0  ;;  %986 = vmatpush.msk.msra.mxu3 %vm313_vm5, %v405_v63 }
 0x112   : > { %987 = vmatmul.msk.f32.vlgmr.msra.gmra.mxu3 %vm309_vm6, %v985_v61  ;;  %990 = vmatmul.msk.f32.vlgmr.msrb.gmra.mxu0 %vm309_vm6, %v988_v0 }
 0x113   : > { %998 = vmatpush.msk.msrb.mxu3 %vm313_vm5, %v549_v1  ;;  %996 = vmatmul.msk.f32.vlgmr.msrb.gmra.mxu2 %vm309_vm6, %v994_v3  ;;  %v896_v3 = vld [vmem:[%s1355_s4] sm:$0xff] }
 0x114   : > { %v360_v11 = vpop.f32.mrf.mxu1 }
 0x117   : > { %v475_v5 = vpop.permute.xlu1 %474 }
 0x118   : > { %v477_v8 = vsel %vm1260_vm9, %v475_v5, 0.0  ;;  %v618_v28 = vpop.permute.xlu0 %617 }
 0x119   : > { %992 = vmatpush.msk.msrb.mxu1 %vm313_vm5, %v477_v8  ;;  %vm626_vm5 = vcmask 597064  }
 0x11a   : > { %999 = vmatmul.msk.f32.vlgmr.msrb.gmra.mxu3 %vm309_vm6, %v997_v6  ;;  %993 = vmatmul.msk.f32.vlgmr.msrb.gmra.mxu1 %vm309_vm6, %v991_v7 }
 0x11b   : > { %1002 = vmatmul.msk.f32.vlgmr.msra.gmra.mxu0 %vm309_vm6, %v1000_v9  ;;  %vm638_vm6 = vcmask 64512  }
 0x187   : > { %v334_v10 = vpop.f32.mrf.mxu0 }
 0x188   : > { %v361_v12 = vadd.f32 %v360_v11, %v334_v10 }
 0x18e   : > { %v395_v14 = vpop.f32.mrf.mxu2 }
 0x18f   : > { %v467_v15 = vpop.f32.mrf.mxu0  ;;  %v398_v16 = vadd.f32 %v395_v14, %v361_v12 }
 0x195   : > { %v431_v17 = vpop.f32.mrf.mxu3 }
 0x196   : > { %v434_v18 = vadd.f32 %v431_v17, %v398_v16  ;;  %v539_v21 = vpop.f32.mrf.mxu2 }
 0x197   : > { %v503_v19 = vpop.f32.mrf.mxu1 }
 0x198   : > { %v470_v20 = vadd.f32 %v467_v15, %v434_v18  ;;  %v611_v26 = vpop.f32.mrf.mxu0 }
 0x19a   : > { %v506_v22 = vadd.f32 %v503_v19, %v470_v20 }
 0x19c   : > { %v542_v24 = vadd.f32 %v539_v21, %v506_v22 }
 0x19d   : > { %v575_v25 = vpop.f32.mrf.mxu3 }
 0x19e   : > { %v578_v27 = vadd.f32 %v575_v25, %v542_v24 }
 0x1a0   : > { %v614_v29 = vadd.f32 %v611_v26, %v578_v27 }
 0x1a2   : > { %v620_v30 = vadd.f32 %v618_v28, %v614_v29 }
 0x1a4   : > { %v621_v31 = vmax.f32 %v620_v30, 0.0 }
 0x1a6   : > { %623 = vrot.lane.b32.xlu1 %v621_v31, %s1065_s8 }
 0x218   : > { %v624_v32 = vpop.permute.xlu1 %623 }
 0x219   : > { %627 = vst.msk [vmem:[#allocation3] sm:$0xff] %vm626_vm5, %v624_v32 }
 0x220   : > { %v628_v33 = vld [vmem:[#allocation3] sm:$0xff] }
 0x221   : > { %715 = vrot.lane.b32.xlu0 %v628_v33, %s1071_s15  ;;  %632 = vrot.lane.b32.xlu1 %v628_v33, %s1068_s12 }
 0x222   : > { %685 = vrot.lane.b32.xlu2 %v628_v33, %s1069_s13  ;;  %1006 = vmatpush.msk.msra.mxu2 %vm1134_vm4, %v628_v33  ;;  %vm910_vm4 = vcmask 523264  }
 0x223   : > { %1007 = vmatmul.msk.f32.vlgmr.msra.gmra.mxu2 %vm638_vm6, %v630_v34 }
 0x229   : > { %835 = vrot.lane.b32.xlu0 %v628_v33, %s1072_s16  ;;  %805 = vrot.lane.b32.xlu1 %v628_v33, %s1067_s11 }
 0x22a   : > { %775 = vrot.lane.b32.xlu2 %v628_v33, %s1074_s18 }
 0x231   : > { %865 = vrot.lane.b32.xlu1 %v628_v33, %s1073_s17  ;;  %906 = vperm.xlu0 %1055, %v1171_v23  }
 0x232   : > { %745 = vrot.lane.b32.xlu2 %v628_v33, %s1070_s14 }
 0x23a   : > { %901 = vperm.xlu2 %1054, %v1171_v23   ;;  %v1020_v23 = vld [vmem:[%s1353_s2 + $0x30] sm:$0xff] }
 0x27c   : > { %v686_v35 = vpop.permute.xlu2 %685 }
 0x27d   : > { %1009 = vmatpush.msk.msra.mxu3 %vm1193_vm0, %v686_v35 }
 0x27e   : > { %1010 = vmatmul.msk.f32.vlgmr.msra.gmra.mxu3 %vm638_vm6, %v1008_v13 }
 0x284   : > { %v776_v40 = vpop.permute.xlu2 %775 }
 0x285   : > { %1018 = vmatpush.msk.msrb.mxu2 %vm1260_vm9, %v776_v40 }
 0x286   : > { %1019 = vmatmul.msk.f32.vlgmr.msrb.gmra.mxu2 %vm638_vm6, %v1017_v36 }
 0x28c   : > { %v746_v48 = vpop.permute.xlu2 %745 }
 0x293   : > { %v716_v45 = vpop.permute.xlu0 %715  ;;  %v633_v46 = vpop.permute.xlu1 %632 }
 0x294   : > { %1004 = vmatpush.msk.msra.mxu1 %vm1185_vm14, %v633_v46  ;;  %1012 = vmatpush.msk.msrb.mxu0 %vm1233_vm7, %v716_v45  ;;  %v902_v6 = vpop.permute.xlu2 %901 }
 0x295   : > { %1013 = vmatmul.msk.f32.vlgmr.msrb.gmra.mxu0 %vm638_vm6, %v1011_v39  ;;  %1005 = vmatmul.msk.f32.vlgmr.msra.gmra.mxu1 %vm638_vm6, %v1003_v47 }
 0x296   : > { %1015 = vmatpush.msk.msrb.mxu1 %vm1189_vm15, %v746_v48 }
 0x29b   : > { %v836_v37 = vpop.permute.xlu0 %835  ;;  %v806_v50 = vpop.permute.xlu1 %805 }
 0x29c   : > { %1021 = vmatpush.msk.msrb.mxu3 %vm1198_vm1, %v806_v50  ;;  %1024 = vmatpush.msk.msra.mxu0 %vm1237_vm8, %v836_v37 }
 0x29d   : > { %1022 = vmatmul.msk.f32.vlgmr.msrb.gmra.mxu3 %vm638_vm6, %v1020_v23  ;;  %1025 = vmatmul.msk.f32.vlgmr.msra.gmra.mxu0 %vm638_vm6, %v1023_v49 }
 0x29e   : > { %1016 = vmatmul.msk.f32.vlgmr.msrb.gmra.mxu1 %vm638_vm6, %v1014_v51 }
 0x2a3   : > { %v866_v38 = vpop.permute.xlu1 %865  ;;  %v907_v8 = vpop.permute.xlu0 %906 }
 0x2a4   : > { %1027 = vmatpush.msk.msra.mxu1 %vm1203_vm2, %v866_v38 }
 0x2a6   : > { %1028 = vmatmul.msk.f32.vlgmr.msra.gmra.mxu1 %vm638_vm6, %v1026_v52  ;;  %v682_v41 = vpop.f32.mrf.mxu2 }
 0x301   : > { %v711_v54 = vpop.f32.mrf.mxu3 }
 0x309   : > { %v801_v61 = vpop.f32.mrf.mxu2 }
 0x312   : > { %v659_v53 = vpop.f32.mrf.mxu1  ;;  %v741_v56 = vpop.f32.mrf.mxu0 }
 0x313   : > { %v683_v55 = vadd.f32 %v682_v41, %v659_v53 }
 0x315   : > { %v714_v57 = vadd.f32 %v711_v54, %v683_v55 }
 0x317   : > { %v744_v58 = vadd.f32 %v741_v56, %v714_v57 }
 0x31a   : > { %v861_v0 = vpop.f32.mrf.mxu0 }
 0x31b   : > { %v771_v59 = vpop.f32.mrf.mxu1 }
 0x31c   : > { %v774_v60 = vadd.f32 %v771_v59, %v744_v58 }
 0x31e   : > { %v804_v62 = vadd.f32 %v801_v61, %v774_v60 }
 0x320   : > { %v831_v63 = vpop.f32.mrf.mxu3 }
 0x321   : > { %v834_v1 = vadd.f32 %v831_v63, %v804_v62 }
 0x323   : > { %v864_v2 = vadd.f32 %v861_v0, %v834_v1  ;;  %v891_v44 = vpop.f32.mrf.mxu1 }
 0x325   : > { %v894_v4 = vadd.f32 %v891_v44, %v864_v2 }
 0x327   : > { %v897_v5 = vadd.f32 %v896_v3, %v894_v4 }
 0x329   : > { %v898_v7 = vmax.f32 %v897_v5, 0.0 }
 0x32b   : > { %v904_v9 = vmul.f32 %v902_v6, %v898_v7 }
 0x32d   : > { %v909_v10 = vadd.f32 %v907_v8, %v904_v9 }
 0x32f   : > { %911 = vst.msk [vmem:[%s1126_s7] sm:$0xff] %vm910_vm4, %v909_v10 }
 0x330 PF: > { %s16_s21 = sadd.s32 1, %s1062_s21  }
 0x331   : > { %p13_p5 = scmp.ge.s32.totalorder %s16_s21, 4  }
 0x333   :  { %15 = sbr.rel (!%p13_p5) target bundleno = 1 (0x1), region = 97 }

</bundles_post_ra>
